<compile_context>
chip_gen: v7x
topology: tpu7x:2x2x1
jax: 0.10.0
libtpu: 0.0.40
codegen_flags: <defaults>
</compile_context>

<pallas_src>
import functools

import jax
import jax.numpy as jnp
from jax import lax
from jax.experimental import pallas as pl
from jax.experimental.pallas import tpu as pltpu


def _round_up(x, m):
    return ((x + m - 1) // m) * m


# ----------------------------------------------------------------------------
# Kernel
# ----------------------------------------------------------------------------
def ppo_fused_kernel(x_ref, w1_ref, b1_ref, w2_ref, b2_ref, w3_ref, b3_ref,
                     out_ref, *, action_dim):
    # Layer 1 (actor || critic share the input): (TB, S_PAD) @ (S_PAD, 2H)
    x = x_ref[...]                                                   # bf16
    h = jnp.dot(x, w1_ref[...], preferred_element_type=jnp.float32) + b1_ref[...]
    h = jnp.maximum(h, 0.0)

    # Layer 2 (block-diagonal): (TB, 2H) @ (2H, 2H)
    h = jnp.dot(h.astype(jnp.bfloat16), w2_ref[...],
                preferred_element_type=jnp.float32) + b2_ref[...]
    h = jnp.maximum(h, 0.0)

    # Layer 3 (block-diagonal, lane-padded): (TB, 2H) @ (2H, OUT_PAD)
    # Columns [0, A) = actor logits, column A = critic value, rest = 0 pad.
    z = jnp.dot(h.astype(jnp.bfloat16), w3_ref[...],
                preferred_element_type=jnp.float32) + b3_ref[...]

    # Masked softmax over the first `action_dim` lanes only.
    col = lax.broadcasted_iota(jnp.int32, z.shape, 1)
    is_logit = col < action_dim
    logits = jnp.where(is_logit, z, -jnp.inf)
    m = jnp.max(logits, axis=-1, keepdims=True)
    e = jnp.exp(logits - m)                          # exp(-inf) == 0 on pad cols
    denom = jnp.sum(e, axis=-1, keepdims=True)
    probs = e * pl.reciprocal(denom, approx=True)    # EUP vrcp, VPU divide freed

    # Lane-dense combined store: [probs(0:A) | value(A) | zeros].
    out_ref[...] = jnp.where(col == action_dim, z, probs).astype(out_ref.dtype)


# ----------------------------------------------------------------------------
# Wrapper
# ----------------------------------------------------------------------------
def ppo_forward(x, fused, *, action_dim, tile_b=512):
    """x: (B, state_dim) f32.  fused: dict from fuse_params().  Returns (probs, value)."""
    B, S = x.shape
    w1, b1, w2, b2, w3, b3 = (fused[k] for k in ("w1", "b1", "w2", "b2", "w3", "b3"))
    s_pad = w1.shape[0]
    two_h = w1.shape[1]
    out_pad = w3.shape[1]

    # Large parallel batch tiles when B is big; shrink to B (8-aligned) when tiny.
    tb = min(tile_b, _round_up(B, 8))
    b_pad = _round_up(B, tb)
    grid = (b_pad // tb,)

    # Host-side pad: batch to a tile multiple, features to 128 lanes, cast bf16.
    x_p = jnp.pad(x, ((0, b_pad - B), (0, s_pad - S))).astype(jnp.bfloat16)

    def full_spec(shape):
        return pl.BlockSpec(shape, lambda i: (0, 0))   # resident across the grid

    flops = 2 * b_pad * (s_pad * two_h + two_h * two_h + two_h * out_pad)
    bytes_accessed = (
        x_p.size * x_p.dtype.itemsize
        + sum(a.size * a.dtype.itemsize for a in (w1, b1, w2, b2, w3, b3))
        + b_pad * out_pad * 4
    )

    out = pl.pallas_call(
        functools.partial(ppo_fused_kernel, action_dim=action_dim),
        out_shape=jax.ShapeDtypeStruct((b_pad, out_pad), jnp.float32),
        grid_spec=pltpu.PrefetchScalarGridSpec(
            num_scalar_prefetch=0,
            grid=grid,
            in_specs=[
                pl.BlockSpec((tb, s_pad), lambda i: (i, 0)),   # x tile (streamed)
                full_spec((s_pad, two_h)), full_spec((1, two_h)),
                full_spec((two_h, two_h)), full_spec((1, two_h)),
                full_spec((two_h, out_pad)), full_spec((1, out_pad)),
            ],
            out_specs=pl.BlockSpec((tb, out_pad), lambda i: (i, 0)),
        ),
        compiler_params=pltpu.CompilerParams(
            dimension_semantics=("parallel",),          # megacore / v7x 2-TC shard
            vmem_limit_bytes=32 * 1024 * 1024,
        ),
        cost_estimate=pl.CostEstimate(
            flops=flops,
            transcendentals=b_pad * out_pad,
            bytes_accessed=bytes_accessed,
        ),
    )(x_p, w1, b1, w2, b2, w3, b3)

    probs = out[:B, :action_dim]
    value = out[:B, action_dim:action_dim + 1]
    return probs, value


# ----------------------------------------------------------------------------
# Parameter init (mimics nn.Linear) and fusion into the kernel layout
# ----------------------------------------------------------------------------
def init_params(key, state_dim, action_dim, hidden_dim=128):
    """Per-layer params, (in, out) weights and (1, out) biases, f32."""
    def linear(key, fan_in, fan_out):
        k_w, k_b = jax.random.split(key)
        bound = 1.0 / jnp.sqrt(jnp.float32(fan_in))
        w = jax.random.uniform(k_w, (fan_in, fan_out), jnp.float32, -bound, bound)
        b = jax.random.uniform(k_b, (1, fan_out), jnp.float32, -bound, bound)
        return w, b

    keys = jax.random.split(key, 6)
    aw1, ab1 = linear(keys[0], state_dim, hidden_dim)
    aw2, ab2 = linear(keys[1], hidden_dim, hidden_dim)
    aw3, ab3 = linear(keys[2], hidden_dim, action_dim)
    cw1, cb1 = linear(keys[3], state_dim, hidden_dim)
    cw2, cb2 = linear(keys[4], hidden_dim, hidden_dim)
    cw3, cb3 = linear(keys[5], hidden_dim, 1)
    return dict(
        aw1=aw1, ab1=ab1, aw2=aw2, ab2=ab2, aw3=aw3, ab3=ab3,
        cw1=cw1, cb1=cb1, cw2=cw2, cb2=cb2, cw3=cw3, cb3=cb3,
    )


def fuse_params(p, state_dim, action_dim, hidden_dim=128):
    """Concatenate / block-diagonalize actor+critic layers once, bf16 weights."""
    H, A, S = hidden_dim, action_dim, state_dim
    s_pad = _round_up(max(S, 1), 128)
    out_pad = _round_up(A + 1, 128)

    # Layer 1: shared input x -> [actor_h | critic_h]
    w1 = jnp.concatenate([p["aw1"], p["cw1"]], axis=1)           # (S, 2H)
    w1 = jnp.pad(w1, ((0, s_pad - S), (0, 0)))                   # (s_pad, 2H)
    b1 = jnp.concatenate([p["ab1"], p["cb1"]], axis=1)           # (1, 2H)

    # Layer 2: block-diagonal (actor hidden only feeds actor, same for critic).
    z = jnp.zeros((H, H), jnp.float32)
    w2 = jnp.block([[p["aw2"], z], [z, p["cw2"]]])               # (2H, 2H)
    b2 = jnp.concatenate([p["ab2"], p["cb2"]], axis=1)           # (1, 2H)

    # Layer 3: block-diagonal, lane-padded -> cols [0,A)=logits, col A=value.
    w3 = jnp.zeros((2 * H, out_pad), jnp.float32)
    w3 = w3.at[:H, :A].set(p["aw3"])
    w3 = w3.at[H:, A:A + 1].set(p["cw3"])
    b3 = jnp.zeros((1, out_pad), jnp.float32)
    b3 = b3.at[:, :A].set(p["ab3"])
    b3 = b3.at[:, A:A + 1].set(p["cb3"])

    return dict(
        w1=w1.astype(jnp.bfloat16), b1=b1,
        w2=w2.astype(jnp.bfloat16), b2=b2,
        w3=w3.astype(jnp.bfloat16), b3=b3,
    )


def ppo_reference(x, p):
    """Pure-JAX f32 reference matching the PyTorch forward."""
    h = jnp.maximum(x @ p["aw1"] + p["ab1"], 0.0)
    h = jnp.maximum(h @ p["aw2"] + p["ab2"], 0.0)
    logits = h @ p["aw3"] + p["ab3"]
    probs = jax.nn.softmax(logits, axis=-1)
    g = jnp.maximum(x @ p["cw1"] + p["cb1"], 0.0)
    g = jnp.maximum(g @ p["cw2"] + p["cb2"], 0.0)
    value = g @ p["cw3"] + p["cb3"]
    return probs, value


if __name__ == "__main__":
    B, STATE_DIM, ACTION_DIM, HIDDEN = 8, 32, 8, 128

    key = jax.random.PRNGKey(0)
    k_x, k_p = jax.random.split(key)
    x = jax.random.normal(k_x, (B, STATE_DIM), jnp.float32)
    params = init_params(k_p, STATE_DIM, ACTION_DIM, HIDDEN)
    fused = fuse_params(params, STATE_DIM, ACTION_DIM, HIDDEN)

    probs, value = ppo_forward(x, fused, action_dim=ACTION_DIM)
    probs = jax.block_until_ready(probs)
    value = jax.block_until_ready(value)

    ref_probs, ref_value = ppo_reference(x, params)
    assert probs.shape == (B, ACTION_DIM) and value.shape == (B, 1)
    # bf16 MXU operands + approx reciprocal -> tolerance loosened vs f32 reference
    # (deliberate precision/perf trade from the review).
    assert jnp.allclose(probs, ref_probs, atol=5e-2, rtol=5e-2)
    assert jnp.allclose(value, ref_value, atol=5e-2, rtol=5e-2)
    assert jnp.allclose(jnp.sum(probs, axis=-1), 1.0, atol=5e-3)

    print("KERNEL_OK")
</pallas_src>

<mosaic_0001>
module attributes {stable_mosaic.version = 11 : i64} {
  func.func @ppo_fused_kernel(%arg0: i32, %arg1: memref<8x128xbf16, #tpu.memory_space<vmem>>, %arg2: memref<128x256xbf16, #tpu.memory_space<vmem>>, %arg3: memref<1x256xf32, #tpu.memory_space<vmem>>, %arg4: memref<256x256xbf16, #tpu.memory_space<vmem>>, %arg5: memref<1x256xf32, #tpu.memory_space<vmem>>, %arg6: memref<256x128xbf16, #tpu.memory_space<vmem>>, %arg7: memref<1x128xf32, #tpu.memory_space<vmem>>, %arg8: memref<8x128xf32, #tpu.memory_space<vmem>>) attributes {dimension_semantics = [#tpu.dimension_semantics<parallel>], iteration_bounds = array<i64: 1>, scalar_prefetch = 0 : i64, scratch_operands = 0 : i64, tpu.core_type = #tpu.core_type<tc>, window_params = [{transform_indices = @transform_0, window_bounds = array<i64: 8, 128>}, {pipeline_mode = #tpu.pipeline_mode<synchronous>, transform_indices = @transform_1, window_bounds = array<i64: 128, 256>}, {pipeline_mode = #tpu.pipeline_mode<synchronous>, transform_indices = @transform_2, window_bounds = array<i64: 1, 256>}, {pipeline_mode = #tpu.pipeline_mode<synchronous>, transform_indices = @transform_3, window_bounds = array<i64: 256, 256>}, {pipeline_mode = #tpu.pipeline_mode<synchronous>, transform_indices = @transform_4, window_bounds = array<i64: 1, 256>}, {pipeline_mode = #tpu.pipeline_mode<synchronous>, transform_indices = @transform_5, window_bounds = array<i64: 256, 128>}, {pipeline_mode = #tpu.pipeline_mode<synchronous>, transform_indices = @transform_6, window_bounds = array<i64: 1, 128>}, {transform_indices = @transform_7, window_bounds = array<i64: 8, 128>}]} {
    %c0 = arith.constant 0 : index
    %c0_0 = arith.constant 0 : index
    %0 = vector.load %arg1[%c0, %c0_0] : memref<8x128xbf16, #tpu.memory_space<vmem>>, vector<8x128xbf16>
    %c0_1 = arith.constant 0 : index
    %c0_2 = arith.constant 0 : index
    %1 = vector.load %arg2[%c0_1, %c0_2] : memref<128x256xbf16, #tpu.memory_space<vmem>>, vector<128x256xbf16>
    %cst = arith.constant dense<0.000000e+00> : vector<8x256xf32>
    %2 = tpu.matmul %0, %1, %cst {dimension_numbers = #tpu.dot_dimension_numbers<[1], [0], [0], [1], [0, 0, 1, 1], [], []>} : vector<8x128xbf16>, vector<128x256xbf16>, vector<8x256xf32> -> vector<8x256xf32>
    %c0_3 = arith.constant 0 : index
    %c0_4 = arith.constant 0 : index
    %3 = vector.load %arg3[%c0_3, %c0_4] : memref<1x256xf32, #tpu.memory_space<vmem>>, vector<1x256xf32>
    %4 = vector.broadcast %3 : vector<1x256xf32> to vector<8x256xf32>
    %5 = arith.addf %2, %4 : vector<8x256xf32>
    %cst_5 = arith.constant 0.000000e+00 : f32
    %6 = vector.broadcast %cst_5 : f32 to vector<8x256xf32>
    %7 = arith.maximumf %5, %6 : vector<8x256xf32>
    %8 = arith.truncf %7 : vector<8x256xf32> to vector<8x256xbf16>
    %c0_6 = arith.constant 0 : index
    %c0_7 = arith.constant 0 : index
    %9 = vector.load %arg4[%c0_6, %c0_7] : memref<256x256xbf16, #tpu.memory_space<vmem>>, vector<256x256xbf16>
    %cst_8 = arith.constant dense<0.000000e+00> : vector<8x256xf32>
    %10 = tpu.matmul %8, %9, %cst_8 {dimension_numbers = #tpu.dot_dimension_numbers<[1], [0], [0], [1], [0, 0, 1, 1], [], []>} : vector<8x256xbf16>, vector<256x256xbf16>, vector<8x256xf32> -> vector<8x256xf32>
    %c0_9 = arith.constant 0 : index
    %c0_10 = arith.constant 0 : index
    %11 = vector.load %arg5[%c0_9, %c0_10] : memref<1x256xf32, #tpu.memory_space<vmem>>, vector<1x256xf32>
    %12 = vector.broadcast %11 : vector<1x256xf32> to vector<8x256xf32>
    %13 = arith.addf %10, %12 : vector<8x256xf32>
    %cst_11 = arith.constant 0.000000e+00 : f32
    %14 = vector.broadcast %cst_11 : f32 to vector<8x256xf32>
    %15 = arith.maximumf %13, %14 : vector<8x256xf32>
    %16 = arith.truncf %15 : vector<8x256xf32> to vector<8x256xbf16>
    %c0_12 = arith.constant 0 : index
    %c0_13 = arith.constant 0 : index
    %17 = vector.load %arg6[%c0_12, %c0_13] : memref<256x128xbf16, #tpu.memory_space<vmem>>, vector<256x128xbf16>
    %cst_14 = arith.constant dense<0.000000e+00> : vector<8x128xf32>
    %18 = tpu.matmul %16, %17, %cst_14 {dimension_numbers = #tpu.dot_dimension_numbers<[1], [0], [0], [1], [0, 0, 1, 1], [], []>} : vector<8x256xbf16>, vector<256x128xbf16>, vector<8x128xf32> -> vector<8x128xf32>
    %c0_15 = arith.constant 0 : index
    %c0_16 = arith.constant 0 : index
    %19 = vector.load %arg7[%c0_15, %c0_16] : memref<1x128xf32, #tpu.memory_space<vmem>>, vector<1x128xf32>
    %20 = vector.broadcast %19 : vector<1x128xf32> to vector<8x128xf32>
    %21 = arith.addf %18, %20 : vector<8x128xf32>
    %22 = tpu.iota {dimensions = array<i32: 1>} : vector<8x128xi32>
    %c8_i32 = arith.constant 8 : i32
    %23 = vector.broadcast %c8_i32 : i32 to vector<8x128xi32>
    %24 = arith.cmpi slt, %22, %23 : vector<8x128xi32>
    %cst_17 = arith.constant 0xFF800000 : f32
    %25 = vector.broadcast %cst_17 : f32 to vector<8x128xf32>
    %26 = arith.select %24, %21, %25 : vector<8x128xi1>, vector<8x128xf32>
    %cst_18 = arith.constant dense<0xFF800000> : vector<8xf32>
    %27 = vector.multi_reduction <maximumf>, %26, %cst_18 [1] : vector<8x128xf32> to vector<8xf32>
    %28 = vector.shape_cast %27 : vector<8xf32> to vector<8x1xf32>
    %29 = vector.broadcast %28 : vector<8x1xf32> to vector<8x128xf32>
    %30 = arith.subf %26, %29 : vector<8x128xf32>
    %31 = math.exp %30 : vector<8x128xf32>
    %cst_19 = arith.constant dense<0.000000e+00> : vector<8xf32>
    %32 = vector.multi_reduction <add>, %31, %cst_19 [1] : vector<8x128xf32> to vector<8xf32>
    %33 = vector.shape_cast %32 : vector<8xf32> to vector<8x1xf32>
    %34 = tpu.reciprocal %33 {approx = true} : vector<8x1xf32> -> vector<8x1xf32>
    %35 = vector.broadcast %34 : vector<8x1xf32> to vector<8x128xf32>
    %36 = arith.mulf %31, %35 : vector<8x128xf32>
    %c8_i32_20 = arith.constant 8 : i32
    %37 = vector.broadcast %c8_i32_20 : i32 to vector<8x128xi32>
    %38 = arith.cmpi eq, %22, %37 : vector<8x128xi32>
    %39 = arith.select %38, %21, %36 : vector<8x128xi1>, vector<8x128xf32>
    %c0_21 = arith.constant 0 : index
    %c0_22 = arith.constant 0 : index
    %40 = vector.load %arg8[%c0_21, %c0_22] : memref<8x128xf32, #tpu.memory_space<vmem>>, vector<8x128xf32>
    tpu.vector_store %arg8[%c0_21, %c0_22], %39 {strides = array<i32>} : memref<8x128xf32, #tpu.memory_space<vmem>>, vector<8x128xf32>,
    return
  }
  func.func @transform_0(%arg0: i32) -> (i32, i32) {
    %c0_i32 = arith.constant 0 : i32
    %c0_i32_0 = arith.constant 0 : i32
    return %arg0, %c0_i32 : i32, i32
  }
  func.func @transform_1(%arg0: i32) -> (i32, i32) {
    %c0_i32 = arith.constant 0 : i32
    %c0_i32_0 = arith.constant 0 : i32
    %c0_i32_1 = arith.constant 0 : i32
    return %c0_i32, %c0_i32_0 : i32, i32
  }
  func.func @transform_2(%arg0: i32) -> (i32, i32) {
    %c0_i32 = arith.constant 0 : i32
    %c0_i32_0 = arith.constant 0 : i32
    %c0_i32_1 = arith.constant 0 : i32
    return %c0_i32, %c0_i32_0 : i32, i32
  }
  func.func @transform_3(%arg0: i32) -> (i32, i32) {
    %c0_i32 = arith.constant 0 : i32
    %c0_i32_0 = arith.constant 0 : i32
    %c0_i32_1 = arith.constant 0 : i32
    return %c0_i32, %c0_i32_0 : i32, i32
  }
  func.func @transform_4(%arg0: i32) -> (i32, i32) {
    %c0_i32 = arith.constant 0 : i32
    %c0_i32_0 = arith.constant 0 : i32
    %c0_i32_1 = arith.constant 0 : i32
    return %c0_i32, %c0_i32_0 : i32, i32
  }
  func.func @transform_5(%arg0: i32) -> (i32, i32) {
    %c0_i32 = arith.constant 0 : i32
    %c0_i32_0 = arith.constant 0 : i32
    %c0_i32_1 = arith.constant 0 : i32
    return %c0_i32, %c0_i32_0 : i32, i32
  }
  func.func @transform_6(%arg0: i32) -> (i32, i32) {
    %c0_i32 = arith.constant 0 : i32
    %c0_i32_0 = arith.constant 0 : i32
    %c0_i32_1 = arith.constant 0 : i32
    return %c0_i32, %c0_i32_0 : i32, i32
  }
  func.func @transform_7(%arg0: i32) -> (i32, i32) {
    %c0_i32 = arith.constant 0 : i32
    %c0_i32_0 = arith.constant 0 : i32
    return %arg0, %c0_i32 : i32, i32
  }
}

</mosaic_0001>

<bundles_post_ra>
// kernel: tpu_custom_call.1
= control target key start
LH: loop header
LB: loop body
LE: loop exit
PB: predicated region body
PF: predicated region fallthrough
CT: control target
= control target key end

     0   :  { %12 = vsyncpa [#allocation3], 0  ;;  %s1124_s0 = inlined_call_operand.hbm [shape: bf16[8,128], index: 0, kind: input, shape index: {}]   ;;  %s1125_s1 = inlined_call_operand.hbm [shape: bf16[128,256], index: 1, kind: input, shape index: {}]   ;;  %s1126_s2 = inlined_call_operand.vmem [shape: f32[1,256], index: 2, kind: input, shape index: {}]   ;;  %s1127_s3 = inlined_call_operand.hbm [shape: bf16[256,256], index: 3, kind: input, shape index: {}]   ;;  %s1128_s4 = inlined_call_operand.vmem [shape: f32[1,256], index: 4, kind: input, shape index: {}]   ;;  %s1129_s5 = inlined_call_operand.hbm [shape: bf16[256,128], index: 5, kind: input, shape index: {}]   ;;  %s1130_s6 = inlined_call_operand.vmem [shape: f32[1,128], index: 6, kind: input, shape index: {}]   ;;  %s1131_s7 = inlined_call_operand.hbm [shape: f32[8,128], index: 7, kind: output, shape index: {}]  }
   0x1   :  { %13 = vsyncpa [#allocation6], 0 }
   0x2   :  { %14 = vsyncpa [#allocation9], 0 }
   0x3   :  { %15 = vsyncpa [#allocation4], 0  ;;  %s999_s24 = smov [#allocation5]   ;;  %s881_s28 = scalar_lea.hbm %s1125_s1, 2048 }
   0x4   :  { %s31_s25 = sshll.u32 %s999_s24, 4  ;;  %p882_p0 = scmp.ne.s32.totalorder %s1125_s1, %s881_s28  ;;  %s32_s25 = int_to_ptr.vmem [resolvable:$true] %s31_s25 }
   0x5   :  { %p885_p1 = scmp.lt.u32.totalorder %s881_s28, %s1125_s1 }
   0x7   :  { %p887_p2 = pnand %p885_p1, %p882_p0 }
   0x9   :  { %890 = shalt.err (!%p887_p2)
}
   0xa   :  { %s891_s10 = scalar_lea.vmem %s32_s25, 2048  ;;  %p896_p4 = scmp.lt.s32.totalorder %s32_s25, %s32_s25 }
   0xb   :  { %p892_p3 = scmp.ne.s32.totalorder %s32_s25, %s891_s10  ;;  %p897_p5 = scmp.lt.s32.totalorder %s891_s10, %s891_s10 }
   0xd   :  { %p898_p6 = por %p897_p5, %p896_p4 }
   0xf   :  { %p899_p7 = pnand %p898_p6, %p892_p3 }
  0x11   :  { %902 = shalt.err (!%p899_p7)
}
  0x12   :  { %s1000_s11 = smov 128   ;;  %s1001_s12 = smov 8  }
  0x13   :  { %37 = dma.hbm_to_vmem [thread:$0]  %s1125_s1, 2048, %s32_s25, [#allocation6], %s1000_s11, %s1000_s11, %s1001_s12  }
  0x14   :  { %s1002_s15 = smov [#allocation2]   ;;  %s1003_s17 = smov [#allocation7]  }
  0x15   :  { %s22_s16 = sshll.u32 %s1002_s15, 4  ;;  %s45_s18 = sshll.u32 %s1003_s17, 4  ;;  %s23_s16 = int_to_ptr.vmem [resolvable:$true] %s22_s16  ;;  %s46_s18 = int_to_ptr.vmem [resolvable:$true] %s45_s18 }
  0x16   :  { %s903_s21 = scalar_lea.hbm %s1124_s0, 64 }
  0x17   :  { %p904_p8 = scmp.ne.s32.totalorder %s1124_s0, %s903_s21  ;;  %p907_p9 = scmp.lt.u32.totalorder %s903_s21, %s1124_s0 }
  0x19   :  { %p909_p10 = pnand %p907_p9, %p904_p8 }
  0x1b   :  { %912 = shalt.err (!%p909_p10)
}
  0x1c   :  { %s913_s1 = scalar_lea.vmem %s23_s16, 64  ;;  %p918_p12 = scmp.lt.s32.totalorder %s23_s16, %s23_s16 }
  0x1d   :  { %p914_p11 = scmp.ne.s32.totalorder %s23_s16, %s913_s1  ;;  %p919_p13 = scmp.lt.s32.totalorder %s913_s1, %s913_s1 }
  0x1f   :  { %p920_p0 = por %p919_p13, %p918_p12 }
  0x21   :  { %p921_p1 = pnand %p920_p0, %p914_p11 }
  0x23   :  { %924 = shalt.err (!%p921_p1)
}
  0x24   :  { %25 = dma.hbm_to_vmem [thread:$0]  %s1124_s0, 64, %s23_s16, [#allocation3]  }
  0x25   :  { %s925_s30 = scalar_lea.hbm %s1127_s3, 4096 }
  0x26   :  { %p926_p2 = scmp.ne.s32.totalorder %s1127_s3, %s925_s30  ;;  %p929_p3 = scmp.lt.u32.totalorder %s925_s30, %s1127_s3 }
  0x28   :  { %p931_p4 = pnand %p929_p3, %p926_p2 }
  0x2a   :  { %934 = shalt.err (!%p931_p4)
}
  0x2b   :  { %s935_s14 = scalar_lea.vmem %s46_s18, 4096  ;;  %p940_p6 = scmp.lt.s32.totalorder %s46_s18, %s46_s18 }
  0x2c   :  { %p936_p5 = scmp.ne.s32.totalorder %s46_s18, %s935_s14  ;;  %p941_p7 = scmp.lt.s32.totalorder %s935_s14, %s935_s14 }
  0x2e   :  { %p942_p8 = por %p941_p7, %p940_p6 }
  0x30   :  { %p943_p9 = pnand %p942_p8, %p936_p5 }
  0x32   :  { %946 = shalt.err (!%p943_p9)
}
  0x33   :  { %51 = dma.hbm_to_vmem [thread:$0]  %s1127_s3, 4096, %s46_s18, [#allocation6], %s1000_s11, %s1000_s11, %s1001_s12  }
  0x34   :  { %s1004_s16 = smov [#allocation8]   ;;  %s947_s21 = scalar_lea.hbm %s1129_s5, 2048 }
  0x35   :  { %s59_s17 = sshll.u32 %s1004_s16, 4  ;;  %p948_p10 = scmp.ne.s32.totalorder %s1129_s5, %s947_s21  ;;  %s60_s17 = int_to_ptr.vmem [resolvable:$true] %s59_s17 }
  0x36   :  { %p951_p11 = scmp.lt.u32.totalorder %s947_s21, %s1129_s5 }
  0x38   :  { %p953_p12 = pnand %p951_p11, %p948_p10 }
  0x3a   :  { %956 = shalt.err (!%p953_p12)
}
  0x3b   :  { %s957_s1 = scalar_lea.vmem %s60_s17, 2048  ;;  %p962_p0 = scmp.lt.s32.totalorder %s60_s17, %s60_s17 }
  0x3c   :  { %p958_p13 = scmp.ne.s32.totalorder %s60_s17, %s957_s1  ;;  %p963_p1 = scmp.lt.s32.totalorder %s957_s1, %s957_s1 }
  0x3e   :  { %p964_p2 = por %p963_p1, %p962_p0 }
  0x40   :  { %p965_p3 = pnand %p964_p2, %p958_p13 }
  0x42   :  { %968 = shalt.err (!%p965_p3)
}
  0x43   :  { %s1005_s3 = smov 64   ;;  %s1006_s11 = smov 4  }
  0x44   :  { %65 = dma.hbm_to_vmem [thread:$0]  %s1129_s5, 2048, %s60_s17, [#allocation9], %s1005_s3, %s1005_s3, %s1006_s11  }
  0x45   :  { %991 = dma.done.wait [#allocation3], 64  }
  0x46   :  { %992 = vsyncadd [#allocation3], 4294967232 }
  0x47   :  { %993 = dma.done.wait [#allocation6], 6144  }
  0x48   :  { %994 = vsyncadd [#allocation6], 4294961152 }
  0x49   :  { %995 = dma.done.wait [#allocation9], 2048  }
  0x4a   :  { %996 = vsyncadd [#allocation9], 4294965248  ;;  %v1007_v0 = vmov 0   ;;  %v789_v1 = vld [vmem:[#allocation5 + $0x4] ss:$8 sps:$4 sm:$0xff]   ;;  %v865_v54 = vld [vmem:[#allocation8 + $0x50] sm:$0xff]   ;;  %v100_v62 = vlaneseq }
  0x4b   :  { %222 = vmatprep.mubr.bf16.mxu0 %v1007_v0  ;;  %v791_v2 = vld [vmem:[#allocation5] ss:$8 sps:$4 sm:$0xff]   ;;  %190 = vmatprep.subr.bf16.mxu0 %v789_v1  ;;  %v792_v3 = vld [vmem:[#allocation5 + $0x14] ss:$8 sps:$4 sm:$0xff]   ;;  %v794_v4 = vld [vmem:[#allocation5 + $0x10] ss:$8 sps:$4 sm:$0xff]  }
  0x4c   :  { %191 = vmatpush1.bf16.msra.mxu0 %v791_v2  ;;  %v795_v5 = vld [vmem:[#allocation5 + $0x24] ss:$8 sps:$4 sm:$0xff]   ;;  %v797_v6 = vld [vmem:[#allocation5 + $0x20] ss:$8 sps:$4 sm:$0xff]   ;;  %v798_v7 = vld [vmem:[#allocation5 + $0x34] ss:$8 sps:$4 sm:$0xff]  }
  0x4d   :  { %192 = vmatprep.subr.bf16.mxu0 %v792_v3  ;;  %v800_v8 = vld [vmem:[#allocation5 + $0x30] ss:$8 sps:$4 sm:$0xff]   ;;  %v801_v9 = vld [vmem:[#allocation5 + $0x44] ss:$8 sps:$4 sm:$0xff]   ;;  %v815_v11 = vld [vmem:[#allocation7] ss:$8 sps:$4 sm:$0xff]  }
  0x4e   :  { %v813_v10 = vld [vmem:[#allocation7 + $0x4] ss:$8 sps:$4 sm:$0xff]   ;;  %v816_v12 = vld [vmem:[#allocation7 + $0x14] ss:$8 sps:$4 sm:$0xff]   ;;  %v803_v13 = vld [vmem:[#allocation5 + $0x40] ss:$8 sps:$4 sm:$0xff]  }
  0x4f   :  { %439 = vmatprep.subr.bf16.mxu1 %v813_v10  ;;  %v818_v14 = vld [vmem:[#allocation7 + $0x10] ss:$8 sps:$4 sm:$0xff]   ;;  %v819_v15 = vld [vmem:[#allocation7 + $0x24] ss:$8 sps:$4 sm:$0xff]   ;;  %v804_v16 = vld [vmem:[#allocation5 + $0x54] ss:$8 sps:$4 sm:$0xff]  }
  0x50   :  { %193 = vmatpush1.bf16.msra.mxu0 %v794_v4  ;;  %440 = vmatpush1.bf16.msra.mxu1 %v815_v11  ;;  %v806_v17 = vld [vmem:[#allocation5 + $0x50] ss:$8 sps:$4 sm:$0xff]   ;;  %v821_v18 = vld [vmem:[#allocation7 + $0x20] ss:$8 sps:$4 sm:$0xff]   ;;  %v822_v19 = vld [vmem:[#allocation7 + $0x34] ss:$8 sps:$4 sm:$0xff]  }
  0x51   :  { %194 = vmatprep.subr.bf16.mxu0 %v795_v5  ;;  %441 = vmatprep.subr.bf16.mxu1 %v816_v12  ;;  %v807_v20 = vld [vmem:[#allocation5 + $0x64] ss:$8 sps:$4 sm:$0xff]   ;;  %v809_v21 = vld [vmem:[#allocation5 + $0x60] ss:$8 sps:$4 sm:$0xff]   ;;  %v824_v22 = vld [vmem:[#allocation7 + $0x30] ss:$8 sps:$4 sm:$0xff]  }
  0x52   :  { %v825_v23 = vld [vmem:[#allocation7 + $0x44] ss:$8 sps:$4 sm:$0xff]   ;;  %v810_v24 = vld [vmem:[#allocation5 + $0x74] ss:$8 sps:$4 sm:$0xff]   ;;  %v812_v25 = vld [vmem:[#allocation5 + $0x70] ss:$8 sps:$4 sm:$0xff]  }
  0x53   :  { %v827_v26 = vld [vmem:[#allocation7 + $0x40] ss:$8 sps:$4 sm:$0xff]   ;;  %v828_v27 = vld [vmem:[#allocation7 + $0x54] ss:$8 sps:$4 sm:$0xff]   ;;  %v830_v29 = vld [vmem:[#allocation7 + $0x50] ss:$8 sps:$4 sm:$0xff]  }
  0x54   :  { %195 = vmatpush1.bf16.msra.mxu0 %v797_v6  ;;  %442 = vmatpush1.bf16.msra.mxu1 %v818_v14  ;;  %v81_v28 = vld [vmem:[#allocation2] sm:$0xf]  ;;  %v831_v30 = vld [vmem:[#allocation7 + $0x64] ss:$8 sps:$4 sm:$0xff]   ;;  %v833_v31 = vld [vmem:[#allocation7 + $0x60] ss:$8 sps:$4 sm:$0xff]  }
  0x55   :  { %196 = vmatprep.subr.bf16.mxu0 %v798_v7  ;;  %443 = vmatprep.subr.bf16.mxu1 %v819_v15  ;;  %v834_v32 = vld [vmem:[#allocation7 + $0x74] ss:$8 sps:$4 sm:$0xff]   ;;  %v836_v33 = vld [vmem:[#allocation7 + $0x70] ss:$8 sps:$4 sm:$0xff]   ;;  %v837_v34 = vld [vmem:[#allocation7 + $0x84] ss:$8 sps:$4 sm:$0xff]  }
  0x56   :  { %v839_v35 = vld [vmem:[#allocation7 + $0x80] ss:$8 sps:$4 sm:$0xff]   ;;  %v840_v36 = vld [vmem:[#allocation7 + $0x94] ss:$8 sps:$4 sm:$0xff]   ;;  %v842_v37 = vld [vmem:[#allocation7 + $0x90] ss:$8 sps:$4 sm:$0xff]  }
  0x57   :  { %v843_v38 = vld [vmem:[#allocation7 + $0xa4] ss:$8 sps:$4 sm:$0xff]   ;;  %v845_v39 = vld [vmem:[#allocation7 + $0xa0] ss:$8 sps:$4 sm:$0xff]   ;;  %v846_v40 = vld [vmem:[#allocation7 + $0xb4] ss:$8 sps:$4 sm:$0xff]  }
  0x58   :  { %197 = vmatpush1.bf16.msra.mxu0 %v800_v8  ;;  %444 = vmatpush1.bf16.msra.mxu1 %v821_v18  ;;  %v848_v41 = vld [vmem:[#allocation7 + $0xb0] ss:$8 sps:$4 sm:$0xff]   ;;  %v849_v42 = vld [vmem:[#allocation7 + $0xc4] ss:$8 sps:$4 sm:$0xff]   ;;  %v851_v43 = vld [vmem:[#allocation7 + $0xc0] ss:$8 sps:$4 sm:$0xff]  }
  0x59   :  { %198 = vmatprep.subr.bf16.mxu0 %v801_v9  ;;  %445 = vmatprep.subr.bf16.mxu1 %v822_v19  ;;  %v852_v44 = vld [vmem:[#allocation7 + $0xd4] ss:$8 sps:$4 sm:$0xff]   ;;  %v854_v45 = vld [vmem:[#allocation7 + $0xd0] ss:$8 sps:$4 sm:$0xff]   ;;  %v855_v46 = vld [vmem:[#allocation7 + $0xe4] ss:$8 sps:$4 sm:$0xff]  }
  0x5a   :  { %v857_v47 = vld [vmem:[#allocation7 + $0xe0] ss:$8 sps:$4 sm:$0xff]   ;;  %v858_v48 = vld [vmem:[#allocation7 + $0xf4] ss:$8 sps:$4 sm:$0xff]   ;;  %v860_v49 = vld [vmem:[#allocation7 + $0xf0] ss:$8 sps:$4 sm:$0xff]  }
  0x5b   :  { %v861_v50 = vld [vmem:[#allocation8 + $0x40] sm:$0xff]   ;;  %v863_v52 = vld [vmem:[#allocation8 + $0x48] sm:$0xff]   ;;  %v866_v55 = vld [vmem:[#allocation8 + $0x10] sm:$0xff]   ;;  %v101_v63 = vshrl.u32 %v100_v62, 7 }
  0x5c   :  { %199 = vmatpush1.bf16.msra.mxu0 %v803_v13  ;;  %446 = vmatpush1.bf16.msra.mxu1 %v824_v22  ;;  %v862_v51 = vld [vmem:[#allocation8] sm:$0xff]   ;;  %v864_v53 = vld [vmem:[#allocation8 + $0x8] sm:$0xff]   ;;  %v867_v56 = vld [vmem:[#allocation8 + $0x58] sm:$0xff]  }
  0x5d   :  { %200 = vmatprep.subr.bf16.mxu0 %v804_v16  ;;  %447 = vmatprep.subr.bf16.mxu1 %v825_v23  ;;  %v868_v57 = vld [vmem:[#allocation8 + $0x18] sm:$0xff]   ;;  %v869_v58 = vld [vmem:[#allocation8 + $0x60] sm:$0xff]   ;;  %v871_v60 = vld [vmem:[#allocation8 + $0x68] sm:$0xff]   ;;  %v102_v0 = vsub.s32 0, %v101_v63  ;;  %v106_v2 = vsub.s32 1, %v101_v63 }
  0x5e   :  { %v870_v59 = vld [vmem:[#allocation8 + $0x20] sm:$0xff]   ;;  %v872_v61 = vld [vmem:[#allocation8 + $0x28] sm:$0xff]   ;;  %v98_v1 = vld [vmem:[%s1126_s2] sm:$0x3] }
  0x5f   :  { %v103_v3 = vrot.slane %v98_v1, %v102_v0  ;;  %v107_v4 = vrot.slane %v98_v1, %v106_v2  ;;  %v873_v15 = vld [vmem:[#allocation8 + $0x70] sm:$0xff]   ;;  %v876_v18 = vld [vmem:[#allocation8 + $0x38] sm:$0xff]  }
  0x60   :  { %201 = vmatpush1.bf16.msra.mxu0 %v806_v17  ;;  %448 = vmatpush1.bf16.msra.mxu1 %v827_v26  ;;  %v874_v16 = vld [vmem:[#allocation8 + $0x30] sm:$0xff]   ;;  %v875_v17 = vld [vmem:[#allocation8 + $0x78] sm:$0xff]  }
  0x61   :  { %202 = vmatprep.subr.bf16.mxu0 %v807_v20  ;;  %449 = vmatprep.subr.bf16.mxu1 %v828_v27  ;;  %v267_v19 = vld [vmem:[%s1128_s4] sm:$0x3]  ;;  %s1008_s4 = smov [#allocation10]  }
  0x62   :  { %v272_v20 = vrot.slane %v267_v19, %v102_v0  ;;  %s681_s30 = sshll.u32 %s1008_s4, 4  ;;  %s682_s30 = int_to_ptr.vmem [resolvable:$true] %s681_s30 }
  0x63   :  { %p974_p5 = scmp.lt.s32.totalorder %s682_s30, %s682_s30 }
  0x64   :  { %203 = vmatpush1.bf16.msra.mxu0 %v809_v21  ;;  %450 = vmatpush1.bf16.msra.mxu1 %v830_v29  ;;  %v276_v21 = vrot.slane %v267_v19, %v106_v2 }
  0x65   :  { %204 = vmatprep.subr.bf16.mxu0 %v810_v24  ;;  %451 = vmatprep.subr.bf16.mxu1 %v831_v30 }
  0x68   :  { %205 = vmatpush1.bf16.msra.mxu0 %v812_v25  ;;  %452 = vmatpush1.bf16.msra.mxu1 %v833_v31 }
  0x69   :  { %453 = vmatprep.subr.bf16.mxu1 %v834_v32  ;;  %757 = vmatprep.subr.bf16.mxu0 %v861_v50  ;;  %v660_v32 = vand.u32 127, %v100_v62 }
  0x6b   :  { %223 = vmatmul.mubr.bf16.vlgmr.msra.gmra.mrb[0].mxu0 %v81_v28  ;;  %vm661_vm0 = vcmp.lt.s32.totalorder %v660_v32, 8  ;;  %vm672_vm1 = vcmp.eq.s32.totalorder %v660_v32, 8 }
  0x6c   :  { %454 = vmatpush1.bf16.msra.mxu1 %v836_v33  ;;  %758 = vmatpush3.bf16.msra.mxu0 %v862_v51 }
  0x6d   :  { %455 = vmatprep.subr.bf16.mxu1 %v837_v34  ;;  %759 = vmatprep.subr.bf16.mxu0 %v863_v52 }
  0x70   :  { %456 = vmatpush1.bf16.msra.mxu1 %v839_v35  ;;  %760 = vmatpush3.bf16.msra.mxu0 %v864_v53  ;;  %v740_v35 = vld [vmem:[%s1130_s6] ss:$0 sm:$0xff]  ;;  %s969_s6 = scalar_lea.vmem %s682_s30, 128 }
  0x71   :  { %457 = vmatprep.subr.bf16.mxu1 %v840_v36  ;;  %761 = vmatprep.subr.bf16.mxu0 %v865_v54  ;;  %p970_p4 = scmp.ne.s32.totalorder %s682_s30, %s969_s6  ;;  %p975_p6 = scmp.lt.s32.totalorder %s969_s6, %s969_s6 }
  0x73   :  { %p976_p7 = por %p975_p6, %p974_p5 }
  0x74   :  { %458 = vmatpush1.bf16.msra.mxu1 %v842_v37  ;;  %762 = vmatpush3.bf16.msra.mxu0 %v866_v55 }
  0x75   :  { %459 = vmatprep.subr.bf16.mxu1 %v843_v38  ;;  %763 = vmatprep.subr.bf16.mxu0 %v867_v56  ;;  %p977_p8 = pnand %p976_p7, %p970_p4 }
  0x78   :  { %460 = vmatpush1.bf16.msra.mxu1 %v845_v39  ;;  %764 = vmatpush3.bf16.msra.mxu0 %v868_v57 }
  0x79   :  { %461 = vmatprep.subr.bf16.mxu1 %v846_v40  ;;  %765 = vmatprep.subr.bf16.mxu0 %v869_v58 }
  0x7c   :  { %462 = vmatpush1.bf16.msra.mxu1 %v848_v41  ;;  %766 = vmatpush3.bf16.msra.mxu0 %v870_v59 }
  0x7d   :  { %463 = vmatprep.subr.bf16.mxu1 %v849_v42  ;;  %767 = vmatprep.subr.bf16.mxu0 %v871_v60 }
  0x80   :  { %464 = vmatpush1.bf16.msra.mxu1 %v851_v43  ;;  %768 = vmatpush3.bf16.msra.mxu0 %v872_v61 }
  0x81   :  { %465 = vmatprep.subr.bf16.mxu1 %v852_v44  ;;  %769 = vmatprep.subr.bf16.mxu0 %v873_v15 }
  0x84   :  { %466 = vmatpush1.bf16.msra.mxu1 %v854_v45  ;;  %770 = vmatpush3.bf16.msra.mxu0 %v874_v16 }
  0x85   :  { %467 = vmatprep.subr.bf16.mxu1 %v855_v46  ;;  %771 = vmatprep.subr.bf16.mxu0 %v875_v17 }
  0x88   :  { %468 = vmatpush1.bf16.msra.mxu1 %v857_v47  ;;  %772 = vmatpush3.bf16.msra.mxu0 %v876_v18 }
  0x89   :  { %469 = vmatprep.subr.bf16.mxu1 %v858_v48 }
  0x8c   :  { %470 = vmatpush1.bf16.msra.mxu1 %v860_v49 }
 0x13e   :  { %v224_v5 = vpop.f32.mrb[0].mxu0 }
 0x13f   :  { %v225_v6 = vadd.f32 %v224_v5, %v103_v3  ;;  %v226_v7 = vpop.f32.mrb[1].mxu0 }
 0x140   :  { %v227_v8 = vadd.f32 %v226_v7, %v107_v4  ;;  %v228_v9 = vpop.f32.mrb[2].mxu0 }
 0x141   :  { %v231_v10 = vmax.f32 %v225_v6, 0.0  ;;  %v229_v11 = vpop.f32.mrb[3].mxu0 }
 0x142   :  { %v232_v12 = vmax.f32 %v227_v8, 0.0 }
 0x143   :  { %v233_v14 = vpack.c.bf16 %v231_v10, %v231_v10 }
 0x144   :  { %v234_v13 = vpack.c.bf16 %v232_v12, %v232_v12 }
 0x146   :  { %471 = vmatprep.mubr.bf16.mxu1 %v234_v13 }
 0x147   :  { %472 = vmatmul.mubr.bf16.vlgmr.msra.gmra.mrb[0].mxu1 %v233_v14 }
 0x21a   :  { %v473_v22 = vpop.f32.mrb[0].mxu1 }
 0x21b   :  { %v474_v23 = vadd.f32 %v473_v22, %v272_v20  ;;  %v475_v24 = vpop.f32.mrb[1].mxu1 }
 0x21c   :  { %v476_v25 = vadd.f32 %v475_v24, %v276_v21  ;;  %v477_v26 = vpop.f32.mrb[2].mxu1 }
 0x21d   :  { %v480_v27 = vmax.f32 %v474_v23, 0.0  ;;  %v478_v28 = vpop.f32.mrb[3].mxu1 }
 0x21e   :  { %v481_v29 = vmax.f32 %v476_v25, 0.0 }
 0x21f   :  { %v482_v31 = vpack.c.bf16 %v480_v27, %v480_v27 }
 0x220   :  { %v483_v30 = vpack.c.bf16 %v481_v29, %v481_v29 }
 0x222   :  { %651 = vmatprep.mubr.bf16.mxu0 %v483_v30 }
 0x223   :  { %652 = vmatmul.mubr.bf16.vlgmr.msra.gmra.mrb[4].mxu0 %v482_v31 }
 0x2f6   :  { %v773_v33 = vpop.f32.mrb[4].mxu0 }
 0x2f7   :  { %v774_v34 = vpop.f32.mrb[5].mxu0 }
 0x2f8   :  { %v775_v36 = vadd.f32 %v774_v34, %v773_v33  ;;  %v776_v37 = vpop.f32.mrb[6].mxu0 }
 0x2f9   :  { %v777_v38 = vpop.f32.mrb[7].mxu0 }
 0x2fa   :  { %v654_v39 = vadd.f32 %v775_v36, %v740_v35 }
 0x2fc   :  { %v662_v40 = vsel %vm661_vm0, %v654_v39, -inf }
 0x2fd   :  { %663 = vmax.xlane.f32.xlu0 %v662_v40 }
 0x38a   :  { %v664_v41 = vpop.xlane.xlu0 %663 }
 0x38b   :  { %v665_v42 = vsub.f32 %v662_v40, %v664_v41 }
 0x38d   :  { %v666_v43 = vmul.f32 1.442695, %v665_v42 }
 0x38f   :  { %877 = vpow2.f32 %v666_v43 }
 0x399   :  { %v878_v44 = vpop.eup %877 }
 0x39a   :  { %668 = vadd.xlane.f32.xlu0 %v878_v44 }
 0x427   :  { %v669_v45 = vpop.xlane.xlu0 %668 }
 0x428   :  { %879 = vrcp.f32 %v669_v45 }
 0x432   :  { %v880_v46 = vpop.eup %879 }
 0x433   :  { %v671_v47 = vmul.f32 %v880_v46, %v878_v44 }
 0x435   :  { %v673_v48 = vsel %vm672_vm1, %v654_v39, %v671_v47 }
 0x436   :  { %674 = vst [vmem:[#allocation10] sm:$0xff] %v673_v48 }
 0x437   :  { %980 = shalt.err (!%p977_p8)
}
 0x438   :  { %s981_s10 = scalar_lea.hbm %s1131_s7, 128 }
 0x439   :  { %p982_p9 = scmp.ne.s32.totalorder %s1131_s7, %s981_s10  ;;  %p985_p10 = scmp.lt.u32.totalorder %s981_s10, %s1131_s7 }
 0x43b   :  { %p987_p11 = pnand %p985_p10, %p982_p9 }
 0x43d   :  { %990 = shalt.err (!%p987_p11)
}
 0x43e   :  { %684 = dma.vmem_to_hbm [thread:$0]  %s682_s30, 128, %s1131_s7, [#allocation4]  }
 0x43f   :  { %997 = dma.done.wait [#allocation4], 128  }
 0x440   :  { %998 = vsyncadd [#allocation4], 4294967168 }
 0x441   :  { %688 = vsyncpa [#allocation3], 1 }
 0x442   :  { %689 = vsyncpa [#allocation6], 1 }
 0x443   :  { %690 = vsyncpa [#allocation9], 1 }
 0x444   :  { %691 = vsyncpa [#allocation4], 1 }

</bundles_post_ra>
